<compile_context>
chip_gen: v7x
topology: tpu7x:2x2x1
jax: 0.10.0
libtpu: 0.0.40
codegen_flags: <defaults>
</compile_context>

<pallas_src>
import functools

import jax
import jax.numpy as jnp
from jax.experimental import pallas as pl
from jax.experimental.pallas import tpu as pltpu


_F_IN = 310        # input feature width of the CFE MLP
_LANE = 128        # TPU lane width; classifier columns are padded to this


def _round_up(x, m):
    return (x + m - 1) // m * m


def _leaky_relu(x, negative_slope=0.01):
    # max(x, a*x) == LeakyReLU(x) for 0 < a < 1; one vmul + vmax on the VPU.
    return jnp.maximum(x, negative_slope * x)


def deep_coral_kernel(x_ref,
                      w1_ref, b1_ref,
                      w2_ref, b2_ref,
                      w3_ref, b3_ref,
                      wc_ref, bc_ref,
                      out_ref):
    """One batch-tile of the full MLP + classifier head.

    x_ref:   (TB, 310) f32   -- raw input tile, cast to bf16 in-kernel
    w1/b1:   (310, 256) bf16 / (1, 256) f32
    w2/b2:   (256, 128) bf16 / (1, 128) f32
    w3/b3:   (128,  64) bf16 / (1,  64) f32
    wc/bc:   ( 64, Cp) bf16 / (1, Cp) f32   (Cp = round_up(C, 128), zero-padded)
    out_ref: (TB, Cp)  bf16  -- lane-dense padded classifier logits
    """
    x = x_ref[...].astype(jnp.bfloat16)

    h = jnp.dot(x, w1_ref[...], preferred_element_type=jnp.float32) + b1_ref[...]
    h = _leaky_relu(h).astype(jnp.bfloat16)

    h = jnp.dot(h, w2_ref[...], preferred_element_type=jnp.float32) + b2_ref[...]
    h = _leaky_relu(h).astype(jnp.bfloat16)

    h = jnp.dot(h, w3_ref[...], preferred_element_type=jnp.float32) + b3_ref[...]
    h = _leaky_relu(h).astype(jnp.bfloat16)

    logits = jnp.dot(h, wc_ref[...], preferred_element_type=jnp.float32) + bc_ref[...]
    out_ref[...] = logits.astype(out_ref.dtype)


def prepare_params(params):
    """One-time (hoisted) weight prep: bf16 cast + lane-padding of the head.

    Returns (prepared_params, num_cat).  Call once at init; the per-forward
    path then contains no weight padding/casting ops.
    """
    (w1, b1), (w2, b2), (w3, b3), (wc, bc) = params
    num_cat = wc.shape[1]
    out_pad = _round_up(num_cat, _LANE)

    wcp = jnp.zeros((wc.shape[0], out_pad), jnp.bfloat16)
    wcp = wcp.at[:, :num_cat].set(wc.astype(jnp.bfloat16))
    bcp = jnp.zeros((1, out_pad), jnp.float32)
    bcp = bcp.at[:, :num_cat].set(bc.astype(jnp.float32))

    prepared = (
        (w1.astype(jnp.bfloat16), b1.astype(jnp.float32)),
        (w2.astype(jnp.bfloat16), b2.astype(jnp.float32)),
        (w3.astype(jnp.bfloat16), b3.astype(jnp.float32)),
        (wcp, bcp),
    )
    return prepared, num_cat


@functools.partial(jax.jit, static_argnames=("num_cat", "tile_b"))
def deep_coral_forward(data_src, prepared_params, num_cat, tile_b=512):
    """Eval-mode DeepCoral.forward: returns (data_src_cls, loss)."""
    B, F_in = data_src.shape
    assert F_in == _F_IN, "DeepCoral expects 310 input features"
    (w1, b1), (w2, b2), (w3, b3), (wc, bc) = prepared_params
    out_pad = wc.shape[1]
    assert num_cat <= out_pad

    # ---- batch tiling (all shapes are trace-time constants) -----------------
    # Big tiles amortize per-grid-step overhead and keep DMAs long; medium
    # batches are split into >= 2 grid steps so the "parallel" axis can be
    # sharded across both TensorCores on v7x.  Tiles are multiples of 16 so
    # the bf16 output blocks stay sublane-aligned.
    if B >= tile_b:
        eff_tile = tile_b
    elif B >= 32:
        eff_tile = _round_up(-(-B // 2), 16)   # >= 2 grid steps
    else:
        eff_tile = _round_up(max(B, 16), 16)   # one small step
    B_pad = _round_up(B, eff_tile)

    # ---- minimal wrapper-side work: only pad the batch dim if needed --------
    x = data_src.astype(jnp.float32)
    if B_pad != B:
        x = jnp.pad(x, ((0, B_pad - B), (0, 0)))

    grid = (B_pad // eff_tile,)

    def resident(arr):
        # Constant block index (0, 0): the whole tensor stays VMEM-resident and
        # Pallas does not re-DMA a block whose index is unchanged between
        # consecutive grid steps (all weights total < 0.5 MiB in bf16).
        return pl.BlockSpec(arr.shape, lambda i: (0, 0))

    out = pl.pallas_call(
        deep_coral_kernel,
        grid=grid,
        in_specs=[
            # Full 310-wide last dim (== array dim) is a legal block; the f32 ->
            # bf16 cast happens in-kernel, so no padded activation copy in HBM.
            pl.BlockSpec((eff_tile, _F_IN), lambda i: (i, 0)),
            resident(w1), resident(b1),
            resident(w2), resident(b2),
            resident(w3), resident(b3),
            resident(wc), resident(bc),
        ],
        # Lane-dense bf16 output: half the writeback bytes of f32, no vst.msk.
        out_specs=pl.BlockSpec((eff_tile, out_pad), lambda i: (i, 0)),
        out_shape=jax.ShapeDtypeStruct((B_pad, out_pad), jnp.bfloat16),
        compiler_params=pltpu.CompilerParams(
            dimension_semantics=("parallel",)),   # megacore sharding on v7x
    )(x, w1, b1, w2, b2, w3, b3, wc, bc)

    data_src_cls = out[:B, :num_cat].astype(jnp.float32)

    # TODO(synk): CORAL domain-adaptation loss only runs in training mode with
    # a target batch; eval-mode forward returns loss = 0 exactly like PyTorch.
    loss = jnp.float32(0.0)
    return data_src_cls, loss


def init_params(key, number_of_category=4):
    """Deterministic PyTorch-Linear-style init: U(-1/sqrt(fan_in), 1/sqrt(fan_in)).

    Weights are stored [in_features, out_features]; biases as [1, out_features]
    so they broadcast cleanly inside the kernel.
    """
    dims = [(310, 256), (256, 128), (128, 64), (64, number_of_category)]
    params = []
    for (fan_in, fan_out) in dims:
        key, kw, kb = jax.random.split(key, 3)
        bound = 1.0 / jnp.sqrt(float(fan_in))
        w = jax.random.uniform(kw, (fan_in, fan_out), jnp.float32, -bound, bound)
        b = jax.random.uniform(kb, (1, fan_out), jnp.float32, -bound, bound)
        params.append((w, b))
    return params


def reference_forward_f32(data_src, params):
    """Pure-JAX f32 reference of the same forward pass (PyTorch semantics)."""
    (w1, b1), (w2, b2), (w3, b3), (wc, bc) = params
    h = data_src
    for w, b in ((w1, b1), (w2, b2), (w3, b3)):
        h = h @ w + b
        h = jnp.where(h > 0, h, 0.01 * h)
    return h @ wc + bc


def reference_forward_bf16(data_src, params):
    """Pure-JAX reference mirroring the kernel's bf16-operand / f32-accum math,
    including the final bf16 store of the logits."""
    (w1, b1), (w2, b2), (w3, b3), (wc, bc) = params
    h = data_src.astype(jnp.bfloat16)
    for w, b in ((w1, b1), (w2, b2), (w3, b3)):
        h = jnp.dot(h, w.astype(jnp.bfloat16),
                    preferred_element_type=jnp.float32) + b
        h = jnp.maximum(h, 0.01 * h).astype(jnp.bfloat16)
    out = jnp.dot(h, wc.astype(jnp.bfloat16),
                  preferred_element_type=jnp.float32) + bc
    return out.astype(jnp.bfloat16).astype(jnp.float32)


if __name__ == "__main__":
    key = jax.random.PRNGKey(0)
    key, kx = jax.random.split(key)

    batch = 16
    data_src = jax.random.normal(kx, (batch, 310), jnp.float32)

    params = init_params(key, number_of_category=4)
    prepared, num_cat = prepare_params(params)          # hoisted weight prep

    cls_logits, loss = deep_coral_forward(data_src, prepared, num_cat=num_cat)
    cls_logits = jax.block_until_ready(cls_logits)
    loss = jax.block_until_ready(loss)

    assert cls_logits.shape == (batch, num_cat)

    ref_bf16 = reference_forward_bf16(data_src, params)
    ref_f32 = reference_forward_f32(data_src, params)
    # Tight check against a reference using the same bf16/f32-accum math ...
    assert jnp.allclose(cls_logits, ref_bf16, atol=4e-3, rtol=4e-3), \
        "mismatch vs bf16 reference"
    # ... and a looser sanity check against the full-f32 PyTorch-equivalent math.
    assert jnp.allclose(cls_logits, ref_f32, atol=2e-2, rtol=2e-2), \
        "mismatch vs f32 reference"
    assert float(loss) == 0.0

    print("KERNEL_OK")
</pallas_src>

<mosaic_0001>
module attributes {stable_mosaic.version = 11 : i64} {
  func.func @deep_coral_kernel(%arg0: i32, %arg1: memref<16x310xf32, #tpu.memory_space<vmem>>, %arg2: memref<310x256xbf16, #tpu.memory_space<vmem>>, %arg3: memref<1x256xf32, #tpu.memory_space<vmem>>, %arg4: memref<256x128xbf16, #tpu.memory_space<vmem>>, %arg5: memref<1x128xf32, #tpu.memory_space<vmem>>, %arg6: memref<128x64xbf16, #tpu.memory_space<vmem>>, %arg7: memref<1x64xf32, #tpu.memory_space<vmem>>, %arg8: memref<64x128xbf16, #tpu.memory_space<vmem>>, %arg9: memref<1x128xf32, #tpu.memory_space<vmem>>, %arg10: memref<16x128xbf16, #tpu.memory_space<vmem>>) attributes {dimension_semantics = [#tpu.dimension_semantics<parallel>], iteration_bounds = array<i64: 1>, scalar_prefetch = 0 : i64, scratch_operands = 0 : i64, tpu.core_type = #tpu.core_type<tc>, window_params = [{transform_indices = @transform_0, window_bounds = array<i64: 16, 310>}, {pipeline_mode = #tpu.pipeline_mode<synchronous>, transform_indices = @transform_1, window_bounds = array<i64: 310, 256>}, {pipeline_mode = #tpu.pipeline_mode<synchronous>, transform_indices = @transform_2, window_bounds = array<i64: 1, 256>}, {pipeline_mode = #tpu.pipeline_mode<synchronous>, transform_indices = @transform_3, window_bounds = array<i64: 256, 128>}, {pipeline_mode = #tpu.pipeline_mode<synchronous>, transform_indices = @transform_4, window_bounds = array<i64: 1, 128>}, {pipeline_mode = #tpu.pipeline_mode<synchronous>, transform_indices = @transform_5, window_bounds = array<i64: 128, 64>}, {pipeline_mode = #tpu.pipeline_mode<synchronous>, transform_indices = @transform_6, window_bounds = array<i64: 1, 64>}, {pipeline_mode = #tpu.pipeline_mode<synchronous>, transform_indices = @transform_7, window_bounds = array<i64: 64, 128>}, {pipeline_mode = #tpu.pipeline_mode<synchronous>, transform_indices = @transform_8, window_bounds = array<i64: 1, 128>}, {transform_indices = @transform_9, window_bounds = array<i64: 16, 128>}]} {
    %c0 = arith.constant 0 : index
    %c0_0 = arith.constant 0 : index
    %0 = vector.load %arg1[%c0, %c0_0] : memref<16x310xf32, #tpu.memory_space<vmem>>, vector<16x310xf32>
    %1 = arith.truncf %0 : vector<16x310xf32> to vector<16x310xbf16>
    %c0_1 = arith.constant 0 : index
    %c0_2 = arith.constant 0 : index
    %2 = vector.load %arg2[%c0_1, %c0_2] : memref<310x256xbf16, #tpu.memory_space<vmem>>, vector<310x256xbf16>
    %cst = arith.constant dense<0.000000e+00> : vector<16x256xf32>
    %3 = tpu.matmul %1, %2, %cst {dimension_numbers = #tpu.dot_dimension_numbers<[1], [0], [0], [1], [0, 0, 1, 1], [], []>} : vector<16x310xbf16>, vector<310x256xbf16>, vector<16x256xf32> -> vector<16x256xf32>
    %c0_3 = arith.constant 0 : index
    %c0_4 = arith.constant 0 : index
    %4 = vector.load %arg3[%c0_3, %c0_4] : memref<1x256xf32, #tpu.memory_space<vmem>>, vector<1x256xf32>
    %5 = vector.broadcast %4 : vector<1x256xf32> to vector<16x256xf32>
    %6 = arith.addf %3, %5 : vector<16x256xf32>
    %cst_5 = arith.constant 0.00999999977 : f32
    %7 = vector.broadcast %cst_5 : f32 to vector<16x256xf32>
    %8 = arith.mulf %7, %6 : vector<16x256xf32>
    %9 = arith.maximumf %6, %8 : vector<16x256xf32>
    %10 = arith.truncf %9 : vector<16x256xf32> to vector<16x256xbf16>
    %c0_6 = arith.constant 0 : index
    %c0_7 = arith.constant 0 : index
    %11 = vector.load %arg4[%c0_6, %c0_7] : memref<256x128xbf16, #tpu.memory_space<vmem>>, vector<256x128xbf16>
    %cst_8 = arith.constant dense<0.000000e+00> : vector<16x128xf32>
    %12 = tpu.matmul %10, %11, %cst_8 {dimension_numbers = #tpu.dot_dimension_numbers<[1], [0], [0], [1], [0, 0, 1, 1], [], []>} : vector<16x256xbf16>, vector<256x128xbf16>, vector<16x128xf32> -> vector<16x128xf32>
    %c0_9 = arith.constant 0 : index
    %c0_10 = arith.constant 0 : index
    %13 = vector.load %arg5[%c0_9, %c0_10] : memref<1x128xf32, #tpu.memory_space<vmem>>, vector<1x128xf32>
    %14 = vector.broadcast %13 : vector<1x128xf32> to vector<16x128xf32>
    %15 = arith.addf %12, %14 : vector<16x128xf32>
    %cst_11 = arith.constant 0.00999999977 : f32
    %16 = vector.broadcast %cst_11 : f32 to vector<16x128xf32>
    %17 = arith.mulf %16, %15 : vector<16x128xf32>
    %18 = arith.maximumf %15, %17 : vector<16x128xf32>
    %19 = arith.truncf %18 : vector<16x128xf32> to vector<16x128xbf16>
    %c0_12 = arith.constant 0 : index
    %c0_13 = arith.constant 0 : index
    %20 = vector.load %arg6[%c0_12, %c0_13] : memref<128x64xbf16, #tpu.memory_space<vmem>>, vector<128x64xbf16>
    %cst_14 = arith.constant dense<0.000000e+00> : vector<16x64xf32>
    %21 = tpu.matmul %19, %20, %cst_14 {dimension_numbers = #tpu.dot_dimension_numbers<[1], [0], [0], [1], [0, 0, 1, 1], [], []>} : vector<16x128xbf16>, vector<128x64xbf16>, vector<16x64xf32> -> vector<16x64xf32>
    %c0_15 = arith.constant 0 : index
    %c0_16 = arith.constant 0 : index
    %22 = vector.load %arg7[%c0_15, %c0_16] : memref<1x64xf32, #tpu.memory_space<vmem>>, vector<1x64xf32>
    %23 = vector.broadcast %22 : vector<1x64xf32> to vector<16x64xf32>
    %24 = arith.addf %21, %23 : vector<16x64xf32>
    %cst_17 = arith.constant 0.00999999977 : f32
    %25 = vector.broadcast %cst_17 : f32 to vector<16x64xf32>
    %26 = arith.mulf %25, %24 : vector<16x64xf32>
    %27 = arith.maximumf %24, %26 : vector<16x64xf32>
    %28 = arith.truncf %27 : vector<16x64xf32> to vector<16x64xbf16>
    %c0_18 = arith.constant 0 : index
    %c0_19 = arith.constant 0 : index
    %29 = vector.load %arg8[%c0_18, %c0_19] : memref<64x128xbf16, #tpu.memory_space<vmem>>, vector<64x128xbf16>
    %cst_20 = arith.constant dense<0.000000e+00> : vector<16x128xf32>
    %30 = tpu.matmul %28, %29, %cst_20 {dimension_numbers = #tpu.dot_dimension_numbers<[1], [0], [0], [1], [0, 0, 1, 1], [], []>} : vector<16x64xbf16>, vector<64x128xbf16>, vector<16x128xf32> -> vector<16x128xf32>
    %c0_21 = arith.constant 0 : index
    %c0_22 = arith.constant 0 : index
    %31 = vector.load %arg9[%c0_21, %c0_22] : memref<1x128xf32, #tpu.memory_space<vmem>>, vector<1x128xf32>
    %32 = vector.broadcast %31 : vector<1x128xf32> to vector<16x128xf32>
    %33 = arith.addf %30, %32 : vector<16x128xf32>
    %34 = arith.truncf %33 : vector<16x128xf32> to vector<16x128xbf16>
    %c0_23 = arith.constant 0 : index
    %c0_24 = arith.constant 0 : index
    %35 = vector.load %arg10[%c0_23, %c0_24] : memref<16x128xbf16, #tpu.memory_space<vmem>>, vector<16x128xbf16>
    tpu.vector_store %arg10[%c0_23, %c0_24], %34 {strides = array<i32>} : memref<16x128xbf16, #tpu.memory_space<vmem>>, vector<16x128xbf16>,
    return
  }
  func.func @transform_0(%arg0: i32) -> (i32, i32) {
    %c0_i32 = arith.constant 0 : i32
    %c0_i32_0 = arith.constant 0 : i32
    return %arg0, %c0_i32 : i32, i32
  }
  func.func @transform_1(%arg0: i32) -> (i32, i32) {
    %c0_i32 = arith.constant 0 : i32
    %c0_i32_0 = arith.constant 0 : i32
    %c0_i32_1 = arith.constant 0 : i32
    return %c0_i32, %c0_i32_0 : i32, i32
  }
  func.func @transform_2(%arg0: i32) -> (i32, i32) {
    %c0_i32 = arith.constant 0 : i32
    %c0_i32_0 = arith.constant 0 : i32
    %c0_i32_1 = arith.constant 0 : i32
    return %c0_i32, %c0_i32_0 : i32, i32
  }
  func.func @transform_3(%arg0: i32) -> (i32, i32) {
    %c0_i32 = arith.constant 0 : i32
    %c0_i32_0 = arith.constant 0 : i32
    %c0_i32_1 = arith.constant 0 : i32
    return %c0_i32, %c0_i32_0 : i32, i32
  }
  func.func @transform_4(%arg0: i32) -> (i32, i32) {
    %c0_i32 = arith.constant 0 : i32
    %c0_i32_0 = arith.constant 0 : i32
    %c0_i32_1 = arith.constant 0 : i32
    return %c0_i32, %c0_i32_0 : i32, i32
  }
  func.func @transform_5(%arg0: i32) -> (i32, i32) {
    %c0_i32 = arith.constant 0 : i32
    %c0_i32_0 = arith.constant 0 : i32
    %c0_i32_1 = arith.constant 0 : i32
    return %c0_i32, %c0_i32_0 : i32, i32
  }
  func.func @transform_6(%arg0: i32) -> (i32, i32) {
    %c0_i32 = arith.constant 0 : i32
    %c0_i32_0 = arith.constant 0 : i32
    %c0_i32_1 = arith.constant 0 : i32
    return %c0_i32, %c0_i32_0 : i32, i32
  }
  func.func @transform_7(%arg0: i32) -> (i32, i32) {
    %c0_i32 = arith.constant 0 : i32
    %c0_i32_0 = arith.constant 0 : i32
    %c0_i32_1 = arith.constant 0 : i32
    return %c0_i32, %c0_i32_0 : i32, i32
  }
  func.func @transform_8(%arg0: i32) -> (i32, i32) {
    %c0_i32 = arith.constant 0 : i32
    %c0_i32_0 = arith.constant 0 : i32
    %c0_i32_1 = arith.constant 0 : i32
    return %c0_i32, %c0_i32_0 : i32, i32
  }
  func.func @transform_9(%arg0: i32) -> (i32, i32) {
    %c0_i32 = arith.constant 0 : i32
    %c0_i32_0 = arith.constant 0 : i32
    return %arg0, %c0_i32 : i32, i32
  }
}

</mosaic_0001>

<bundles_post_ra>
// kernel: deep_coral_forward.1
= control target key start
LH: loop header
LB: loop body
LE: loop exit
PB: predicated region body
PF: predicated region fallthrough
CT: control target
= control target key end

     0   :  { %14 = vsyncpa [#allocation3], 0  ;;  %s1292_s0 = inlined_call_operand.vmem [shape: f32[16,310], index: 0, kind: input, shape index: {}]   ;;  %s1293_s1 = inlined_call_operand.hbm [shape: bf16[310,256], index: 1, kind: input, shape index: {}]   ;;  %s1294_s2 = inlined_call_operand.vmem [shape: f32[1,256], index: 2, kind: input, shape index: {}]   ;;  %s1295_s3 = inlined_call_operand.hbm [shape: bf16[256,128], index: 3, kind: input, shape index: {}]   ;;  %s1296_s4 = inlined_call_operand.vmem [shape: f32[1,128], index: 4, kind: input, shape index: {}]   ;;  %s1297_s5 = inlined_call_operand.vmem [shape: bf16[128,64], index: 5, kind: input, shape index: {}]   ;;  %s1298_s6 = inlined_call_operand.vmem [shape: f32[1,64], index: 6, kind: input, shape index: {}]   ;;  %s1299_s7 = inlined_call_operand.vmem [shape: bf16[64,128], index: 7, kind: input, shape index: {}]   ;;  %s1300_s8 = inlined_call_operand.vmem [shape: f32[1,128], index: 8, kind: input, shape index: {}]   ;;  %s1301_s9 = inlined_call_operand.vmem [shape: bf16[16,128], index: 9, kind: output, shape index: {}]  }
   0x1   :  { %15 = vsyncpa [#allocation5], 0  ;;  %s1124_s30 = smov [#allocation2]   ;;  %s1076_s13 = scalar_lea.hbm %s1293_s1, 4992 }
   0x2   :  { %s23_s10 = sshll.u32 %s1124_s30, 4  ;;  %p1077_p0 = scmp.ne.s32.totalorder %s1293_s1, %s1076_s13  ;;  %s24_s10 = int_to_ptr.vmem [resolvable:$true] %s23_s10 }
   0x3   :  { %p1080_p1 = scmp.lt.u32.totalorder %s1076_s13, %s1293_s1 }
   0x5   :  { %p1082_p2 = pnand %p1080_p1, %p1077_p0 }
   0x7   :  { %1085 = shalt.err (!%p1082_p2)
}
   0x8   :  { %s1086_s18 = scalar_lea.vmem %s24_s10, 4992  ;;  %p1091_p4 = scmp.lt.s32.totalorder %s24_s10, %s24_s10 }
   0x9   :  { %p1087_p3 = scmp.ne.s32.totalorder %s24_s10, %s1086_s18  ;;  %p1092_p5 = scmp.lt.s32.totalorder %s1086_s18, %s1086_s18 }
   0xb   :  { %p1093_p6 = por %p1092_p5, %p1091_p4 }
   0xd   :  { %p1094_p7 = pnand %p1093_p6, %p1087_p3 }
   0xf   :  { %1097 = shalt.err (!%p1094_p7)
}
  0x10   :  { %s1125_s19 = smov 128   ;;  %s1126_s20 = smov 8  }
  0x11   :  { %29 = dma.hbm_to_vmem [thread:$0]  %s1293_s1, 4992, %s24_s10, [#allocation3], %s1125_s19, %s1125_s19, %s1126_s20  }
  0x12   :  { %s1127_s23 = smov [#allocation4]   ;;  %s1098_s27 = scalar_lea.hbm %s1295_s3, 2048 }
  0x13   :  { %s37_s24 = sshll.u32 %s1127_s23, 4  ;;  %p1099_p8 = scmp.ne.s32.totalorder %s1295_s3, %s1098_s27  ;;  %s38_s24 = int_to_ptr.vmem [resolvable:$true] %s37_s24 }
  0x14   :  { %p1102_p9 = scmp.lt.u32.totalorder %s1098_s27, %s1295_s3 }
  0x16   :  { %p1104_p10 = pnand %p1102_p9, %p1099_p8 }
  0x18   :  { %1107 = shalt.err (!%p1104_p10)
}
  0x19   :  { %s1108_s12 = scalar_lea.vmem %s38_s24, 2048  ;;  %p1113_p12 = scmp.lt.s32.totalorder %s38_s24, %s38_s24 }
  0x1a   :  { %p1109_p11 = scmp.ne.s32.totalorder %s38_s24, %s1108_s12  ;;  %p1114_p13 = scmp.lt.s32.totalorder %s1108_s12, %s1108_s12 }
  0x1c   :  { %p1115_p0 = por %p1114_p13, %p1113_p12 }
  0x1e   :  { %p1116_p1 = pnand %p1115_p0, %p1109_p11 }
  0x20   :  { %1119 = shalt.err (!%p1116_p1)
}
  0x21   :  { %s1128_s1 = smov 64   ;;  %s1129_s10 = smov 4  }
  0x22   :  { %43 = dma.hbm_to_vmem [thread:$0]  %s1295_s3, 2048, %s38_s24, [#allocation5], %s1128_s1, %s1128_s1, %s1129_s10  }
  0x23   :  { %1120 = dma.done.wait [#allocation3], 4992  }
  0x24   :  { %1121 = vsyncadd [#allocation3], 4294962304 }
  0x25   :  { %1122 = dma.done.wait [#allocation5], 2048  }
  0x26   :  { %1123 = vsyncadd [#allocation5], 4294965248  ;;  %v989_v0 = vld [vmem:[#allocation2 + $0x4] ss:$8 sps:$4 sm:$0xff]   ;;  %v991_v1 = vld [vmem:[#allocation2] ss:$8 sps:$4 sm:$0xff]  }
  0x27   :  { %327 = vmatprep.subr.bf16.mxu0 %v989_v0  ;;  %v992_v2 = vld [vmem:[#allocation2 + $0x14] ss:$8 sps:$4 sm:$0xff]   ;;  %v994_v3 = vld [vmem:[#allocation2 + $0x10] ss:$8 sps:$4 sm:$0xff]   ;;  %v995_v4 = vld [vmem:[#allocation2 + $0x24] ss:$8 sps:$4 sm:$0xff]  }
  0x28   :  { %328 = vmatpush1.bf16.msra.mxu0 %v991_v1  ;;  %v997_v5 = vld [vmem:[#allocation2 + $0x20] ss:$8 sps:$4 sm:$0xff]   ;;  %v998_v6 = vld [vmem:[#allocation2 + $0x34] ss:$8 sps:$4 sm:$0xff]   ;;  %v1000_v7 = vld [vmem:[#allocation2 + $0x30] ss:$8 sps:$4 sm:$0xff]  }
  0x29   :  { %329 = vmatprep.subr.bf16.mxu0 %v992_v2  ;;  %v1001_v8 = vld [vmem:[#allocation2 + $0x44] ss:$8 sps:$4 sm:$0xff]   ;;  %v1003_v9 = vld [vmem:[#allocation2 + $0x40] ss:$8 sps:$4 sm:$0xff]   ;;  %v1004_v10 = vld [vmem:[#allocation2 + $0x54] ss:$8 sps:$4 sm:$0xff]  }
  0x2a   :  { %v1006_v11 = vld [vmem:[#allocation2 + $0x50] ss:$8 sps:$4 sm:$0xff]   ;;  %v1007_v12 = vld [vmem:[#allocation2 + $0x64] ss:$8 sps:$4 sm:$0xff]   ;;  %v1009_v16 = vld [vmem:[#allocation2 + $0x60] ss:$8 sps:$4 sm:$0xff]  }
  0x2b   :  { %v62_v13 = vld [vmem:[%s1292_s0 + $0x8] sm:$0xff]  ;;  %v65_v14 = vld [vmem:[%s1292_s0 + $0x20] sm:$0xff]  ;;  %v1010_v17 = vld [vmem:[#allocation2 + $0x74] ss:$8 sps:$4 sm:$0xff]   ;;  %v1130_v52 = vmov 0   ;;  %vm320_vm0 = vcmask 1042432  }
  0x2c   :  { %330 = vmatpush1.bf16.msra.mxu0 %v994_v3  ;;  %v68_v15 = vpack.c.bf16 %v65_v14, %v62_v13  ;;  %v1012_v18 = vld [vmem:[#allocation2 + $0x70] ss:$8 sps:$4 sm:$0xff]   ;;  %v1013_v19 = vld [vmem:[#allocation2 + $0x84] ss:$8 sps:$4 sm:$0xff]   ;;  %v1015_v21 = vld [vmem:[#allocation2 + $0x80] ss:$8 sps:$4 sm:$0xff]  }
  0x2d   :  { %331 = vmatprep.subr.bf16.mxu0 %v995_v4  ;;  %v1048_v20 = vld [vmem:[#allocation4 + $0x40] sm:$0xff]   ;;  %v1050_v24 = vld [vmem:[#allocation4 + $0x48] sm:$0xff]   ;;  %v1052_v26 = vld [vmem:[#allocation4 + $0x50] sm:$0xff]   ;;  %vm316_vm1 = vcmask 441344   ;;  %v1131_v4 = vmov 0.0   ;;  %vm1132_vm2 = vmmov 0  }
  0x2e   :  { %359 = vmatprep.mubr.bf16.mxu0 %v68_v15  ;;  %v1049_v22 = vld [vmem:[#allocation4] sm:$0xff]   ;;  %904 = vmatprep.subr.bf16.mxu1 %v1048_v20  ;;  %v1051_v25 = vld [vmem:[#allocation4 + $0x8] sm:$0xff]   ;;  %v1053_v29 = vld [vmem:[#allocation4 + $0x10] sm:$0xff]   ;;  %vm760_vm3 = vcmask 523264  }
  0x2f   :  { %v1016_v23 = vld [vmem:[#allocation2 + $0x94] ss:$8 sps:$4 sm:$0xff]   ;;  %905 = vmatpush3.bf16.msra.mxu1 %v1049_v22  ;;  %v1018_v27 = vld [vmem:[#allocation2 + $0x90] ss:$8 sps:$4 sm:$0xff]   ;;  %v1019_v28 = vld [vmem:[#allocation2 + $0xa4] ss:$8 sps:$4 sm:$0xff]  }
  0x30   :  { %332 = vmatpush1.bf16.msra.mxu0 %v997_v5  ;;  %906 = vmatprep.subr.bf16.mxu1 %v1050_v24  ;;  %v1054_v30 = vld [vmem:[#allocation4 + $0x58] sm:$0xff]   ;;  %v1021_v31 = vld [vmem:[#allocation2 + $0xa0] ss:$8 sps:$4 sm:$0xff]   ;;  %v1056_v34 = vld [vmem:[#allocation4 + $0x60] sm:$0xff]   ;;  %v111_v5 = vlaneseq }
  0x31   :  { %333 = vmatprep.subr.bf16.mxu0 %v998_v6  ;;  %v1055_v32 = vld [vmem:[#allocation4 + $0x18] sm:$0xff]   ;;  %v1057_v36 = vld [vmem:[#allocation4 + $0x20] sm:$0xff]   ;;  %v1025_v37 = vld [vmem:[#allocation2 + $0xc4] ss:$8 sps:$4 sm:$0xff]  }
  0x32   :  { %v1022_v33 = vld [vmem:[#allocation2 + $0xb4] ss:$8 sps:$4 sm:$0xff]   ;;  %v1024_v35 = vld [vmem:[#allocation2 + $0xb0] ss:$8 sps:$4 sm:$0xff]   ;;  %v1027_v38 = vld [vmem:[#allocation2 + $0xc0] ss:$8 sps:$4 sm:$0xff]  }
  0x33   :  { %907 = vmatpush3.bf16.msra.mxu1 %v1051_v25  ;;  %v1028_v39 = vld [vmem:[#allocation2 + $0xd4] ss:$8 sps:$4 sm:$0xff]   ;;  %v1030_v40 = vld [vmem:[#allocation2 + $0xd0] ss:$8 sps:$4 sm:$0xff]   ;;  %v1031_v41 = vld [vmem:[#allocation2 + $0xe4] ss:$8 sps:$4 sm:$0xff]  }
  0x34   :  { %334 = vmatpush1.bf16.msra.mxu0 %v1000_v7  ;;  %908 = vmatprep.subr.bf16.mxu1 %v1052_v26  ;;  %v1033_v42 = vld [vmem:[#allocation2 + $0xe0] ss:$8 sps:$4 sm:$0xff]   ;;  %v1034_v43 = vld [vmem:[#allocation2 + $0xf4] ss:$8 sps:$4 sm:$0xff]   ;;  %v1036_v44 = vld [vmem:[#allocation2 + $0xf0] ss:$8 sps:$4 sm:$0xff]  }
  0x35   :  { %335 = vmatprep.subr.bf16.mxu0 %v1001_v8  ;;  %v61_v45 = vld [vmem:[%s1292_s0] sm:$0xff]  ;;  %v64_v46 = vld [vmem:[%s1292_s0 + $0x18] sm:$0xff]  ;;  %v108_v54 = vld [vmem:[#allocation2 + $0x130] sm:$0x77]  ;;  %v112_v6 = vshrl.u32 %v111_v5, 7 }
  0x36   :  { %v1039_v47 = vld [vmem:[#allocation2 + $0x104] ss:$8 sps:$4 sm:$0xff]   ;;  %v67_v48 = vpack.c.bf16 %v64_v46, %v61_v45  ;;  %v1037_v49 = vld [vmem:[#allocation2 + $0x100] ss:$8 sps:$4 sm:$0xff]   ;;  %v1042_v50 = vld [vmem:[#allocation2 + $0x114] ss:$8 sps:$4 sm:$0xff]   ;;  %v860_v56 = vcombine.high %v108_v54, %v108_v54  ;;  %v859_v57 = vcombine.low %v108_v54, %v108_v54 }
  0x37   :  { %909 = vmatpush3.bf16.msra.mxu1 %v1053_v29  ;;  %v1040_v51 = vld [vmem:[#allocation2 + $0x110] ss:$8 sps:$4 sm:$0xff]   ;;  %v1045_v53 = vld [vmem:[#allocation2 + $0x124] ss:$8 sps:$4 sm:$0xff]   ;;  %v1043_v55 = vld [vmem:[#allocation2 + $0x120] ss:$8 sps:$4 sm:$0xff]  }
  0x38   :  { %336 = vmatpush1.bf16.msra.mxu0 %v1003_v9  ;;  %910 = vmatprep.subr.bf16.mxu1 %v1054_v30  ;;  %v63_v58 = vld [vmem:[%s1292_s0 + $0x10] sm:$0xff]  ;;  %v66_v59 = vld [vmem:[%s1292_s0 + $0x28] sm:$0xff]  ;;  %v322_v60 = vsel %vm320_vm0, %v859_v57, 0  ;;  %v1058_v62 = vld [vmem:[#allocation4 + $0x68] sm:$0xff]   ;;  %v113_v7 = vsub.s32 0, %v112_v6  ;;  %v117_v9 = vsub.s32 1, %v112_v6 }
  0x39   :  { %337 = vmatprep.subr.bf16.mxu0 %v1004_v10  ;;  %v69_v61 = vpack.c.bf16 %v66_v59, %v63_v58  ;;  %v1059_v63 = vld [vmem:[#allocation4 + $0x28] sm:$0xff]   ;;  %v1060_v0 = vld [vmem:[#allocation4 + $0x70] sm:$0xff]   ;;  %v1062_v2 = vld [vmem:[#allocation4 + $0x78] sm:$0xff]  }
  0x3a   :  { %v1061_v1 = vld [vmem:[#allocation4 + $0x30] sm:$0xff]   ;;  %v1063_v3 = vld [vmem:[#allocation4 + $0x38] sm:$0xff]   ;;  %v109_v8 = vld [vmem:[%s1294_s2] sm:$0x3] }
  0x3b   :  { %911 = vmatpush3.bf16.msra.mxu1 %v1055_v32  ;;  %v114_v10 = vrot.slane %v109_v8, %v113_v7  ;;  %v1064_v30 = vld [vmem:[%s1297_s5] sm:$0xff]   ;;  %v1066_v32 = vld [vmem:[%s1297_s5 + $0x10] sm:$0xff]  }
  0x3c   :  { %338 = vmatpush1.bf16.msra.mxu0 %v1006_v11  ;;  %912 = vmatprep.subr.bf16.mxu1 %v1056_v34  ;;  %v118_v11 = vrot.slane %v109_v8, %v117_v9  ;;  %v1068_v34 = vld [vmem:[%s1297_s5 + $0x20] sm:$0xff]   ;;  %v1074_v54 = vld [vmem:[%s1299_s7 + $0x10] sm:$0xff]  }
  0x3d   :  { %339 = vmatprep.subr.bf16.mxu0 %v1007_v12 }
  0x3f   :  { %913 = vmatpush3.bf16.msra.mxu1 %v1057_v36  ;;  %v1070_v36 = vld [vmem:[%s1297_s5 + $0x30] sm:$0xff]  }
  0x40   :  { %340 = vmatpush1.bf16.msra.mxu0 %v1009_v16  ;;  %914 = vmatprep.subr.bf16.mxu1 %v1058_v62 }
  0x41   :  { %341 = vmatprep.subr.bf16.mxu0 %v1010_v17 }
  0x43   :  { %915 = vmatpush3.bf16.msra.mxu1 %v1059_v63 }
  0x44   :  { %342 = vmatpush1.bf16.msra.mxu0 %v1012_v18  ;;  %916 = vmatprep.subr.bf16.mxu1 %v1060_v0 }
  0x45   :  { %343 = vmatprep.subr.bf16.mxu0 %v1013_v19 }
  0x47   :  { %917 = vmatpush3.bf16.msra.mxu1 %v1061_v1 }
  0x48   :  { %344 = vmatpush1.bf16.msra.mxu0 %v1015_v21  ;;  %918 = vmatprep.subr.bf16.mxu1 %v1062_v2 }
  0x49   :  { %345 = vmatprep.subr.bf16.mxu0 %v1016_v23 }
  0x4b   :  { %919 = vmatpush3.bf16.msra.mxu1 %v1063_v3 }
  0x4c   :  { %346 = vmatpush1.bf16.msra.mxu0 %v1018_v27  ;;  %940 = vmatprep.subr.bf16.mxu1 %v1131_v4 }
  0x4d   :  { %347 = vmatprep.subr.bf16.mxu0 %v1019_v28 }
  0x50   :  { %348 = vmatpush1.bf16.msra.mxu0 %v1021_v31  ;;  %v1065_v31 = vld [vmem:[%s1297_s5 + $0x8] sm:$0xff]  }
  0x51   :  { %349 = vmatprep.subr.bf16.mxu0 %v1022_v33  ;;  %v1067_v33 = vld [vmem:[%s1297_s5 + $0x18] sm:$0xff]  }
  0x54   :  { %350 = vmatpush1.bf16.msra.mxu0 %v1024_v35  ;;  %v1069_v35 = vld [vmem:[%s1297_s5 + $0x28] sm:$0xff]  }
  0x55   :  { %351 = vmatprep.subr.bf16.mxu0 %v1025_v37  ;;  %v1071_v37 = vld [vmem:[%s1297_s5 + $0x38] sm:$0xff]  }
  0x58   :  { %352 = vmatpush1.bf16.msra.mxu0 %v1027_v38 }
  0x59   :  { %353 = vmatprep.subr.bf16.mxu0 %v1028_v39  ;;  %v863_v39 = vld [vmem:[%s1296_s4] ss:$0 sm:$0xff] }
  0x5c   :  { %354 = vmatpush1.bf16.msra.mxu0 %v1030_v40 }
  0x5d   :  { %355 = vmatprep.subr.bf16.mxu0 %v1031_v41 }
  0x60   :  { %356 = vmatpush1.bf16.msra.mxu0 %v1033_v42 }
  0x61   :  { %357 = vmatprep.subr.bf16.mxu0 %v1034_v43 }
  0x64   :  { %358 = vmatpush1.bf16.msra.mxu0 %v1036_v44 }
  0x65   :  { %370 = vmatprep.subr.bf16.mxu0 %v1039_v47 }
  0x67   :  { %360 = vmatmul.mubr.bf16.vlgmr.msra.gmra.mrb[0].mxu0 %v67_v48 }
  0x68   :  { %371 = vmatpush1.bf16.msra.mxu0 %v1037_v49  ;;  %402 = vmatprep.mubr.bf16.mxu0 %v1130_v52 }
  0x69   :  { %372 = vmatprep.subr.bf16.mxu0 %v1042_v50 }
  0x6c   :  { %373 = vmatpush1.bf16.msra.mxu0 %v1040_v51  ;;  %v1072_v51 = vld [vmem:[%s1299_s7] sm:$0xff]  }
  0x6d   :  { %374 = vmatprep.subr.bf16.mxu0 %v1045_v53  ;;  %v1073_v53 = vld [vmem:[%s1299_s7 + $0x8] sm:$0xff]  }
  0x70   :  { %375 = vmatpush1.bf16.msra.mxu0 %v1043_v55  ;;  %v1075_v55 = vld [vmem:[%s1299_s7 + $0x18] sm:$0xff]  }
  0x71   :  { %861 = vmatprep.subr.msk.bf16.mxu0 %vm320_vm0, %v860_v56  ;;  %v880_v56 = vld [vmem:[%s1298_s6] ss:$0 sm:$0xff] }
  0x74   :  { %377 = vmatpush1.bf16.msra.mxu0 %v322_v60 }
  0x77   :  { %862 = vmatmul.mubr.msk.bf16.vlgmr.msra.gmra.mrb[0].mxu0 %vm316_vm1, %v69_v61 }
 0x14a   :  { %v404_v12 = vpop.f32.mrb[0].mxu0 }
 0x14b   :  { %v972_v13 = vadd.f32 %v404_v12, %v114_v10  ;;  %v406_v14 = vpop.f32.mrb[1].mxu0 }
 0x14c   :  { %v973_v15 = vadd.f32 %v406_v14, %v118_v11  ;;  %v408_v16 = vpop.f32.mrb[2].mxu0 }
 0x14d   :  { %v413_v17 = vmul.f32 0.01, %v972_v13  ;;  %v974_v18 = vadd.f32 %v408_v16, %v114_v10  ;;  %v410_v19 = vpop.f32.mrb[3].mxu0 }
 0x14e   :  { %v414_v20 = vmul.f32 0.01, %v973_v15  ;;  %v975_v21 = vadd.f32 %v410_v19, %v118_v11 }
 0x14f   :  { %v415_v22 = vmul.f32 0.01, %v974_v18  ;;  %v417_v24 = vmax.f32 %v972_v13, %v413_v17 }
 0x150   :  { %v416_v23 = vmul.f32 0.01, %v975_v21  ;;  %v418_v26 = vmax.f32 %v973_v15, %v414_v20 }
 0x151   :  { %v419_v25 = vmax.f32 %v974_v18, %v415_v22 }
 0x152   :  { %v420_v27 = vmax.f32 %v975_v21, %v416_v23 }
 0x153   :  { %v421_v28 = vpack.c.bf16 %v419_v25, %v417_v24 }
 0x154   :  { %v422_v29 = vpack.c.bf16 %v420_v27, %v418_v26 }
 0x156   :  { %590 = vmatprep.mubr.bf16.mxu1 %v422_v29 }
 0x157   :  { %591 = vmatmul.mubr.bf16.vlgmr.msra.gmra.mrb[0].mxu1 %v421_v28 }
 0x158   :  { %941 = vmatpush3.bf16.msra.mxu1 %v1064_v30  ;;  %956 = vmatprep.mubr.msk.bf16.mxu1 %vm1132_vm2, %v1131_v4 }
 0x159   :  { %942 = vmatprep.subr.bf16.mxu1 %v1131_v4 }
 0x15c   :  { %943 = vmatpush3.bf16.msra.mxu1 %v1065_v31 }
 0x15d   :  { %944 = vmatprep.subr.bf16.mxu1 %v1131_v4 }
 0x160   :  { %945 = vmatpush3.bf16.msra.mxu1 %v1066_v32 }
 0x161   :  { %946 = vmatprep.subr.bf16.mxu1 %v1131_v4 }
 0x164   :  { %947 = vmatpush3.bf16.msra.mxu1 %v1067_v33 }
 0x165   :  { %948 = vmatprep.subr.bf16.mxu1 %v1131_v4 }
 0x168   :  { %949 = vmatpush3.bf16.msra.mxu1 %v1068_v34 }
 0x169   :  { %950 = vmatprep.subr.bf16.mxu1 %v1131_v4 }
 0x16c   :  { %951 = vmatpush3.bf16.msra.mxu1 %v1069_v35 }
 0x16d   :  { %952 = vmatprep.subr.bf16.mxu1 %v1131_v4 }
 0x170   :  { %953 = vmatpush3.bf16.msra.mxu1 %v1070_v36 }
 0x171   :  { %954 = vmatprep.subr.bf16.mxu1 %v1131_v4 }
 0x174   :  { %955 = vmatpush3.bf16.msra.mxu1 %v1071_v37 }
 0x175   :  { %960 = vmatprep.subr.bf16.mxu1 %v1131_v4 }
 0x22a   :  { %v920_v38 = vpop.f32.mrb[0].mxu1 }
 0x22b   :  { %v921_v40 = vpop.f32.mrb[1].mxu1 }
 0x22c   :  { %v922_v41 = vadd.f32 %v921_v40, %v920_v38  ;;  %v923_v42 = vpop.f32.mrb[2].mxu1 }
 0x22d   :  { %v924_v43 = vpop.f32.mrb[3].mxu1 }
 0x22e   :  { %v593_v44 = vadd.f32 %v922_v41, %v863_v39  ;;  %v925_v45 = vadd.f32 %v924_v43, %v923_v42 }
 0x230   :  { %v599_v46 = vmul.f32 0.01, %v593_v44  ;;  %v596_v47 = vadd.f32 %v925_v45, %v863_v39 }
 0x232   :  { %v600_v48 = vmul.f32 0.01, %v596_v47  ;;  %v601_v49 = vmax.f32 %v593_v44, %v599_v46 }
 0x234   :  { %v602_v50 = vmax.f32 %v596_v47, %v600_v48 }
 0x236   :  { %v603_v52 = vpack.c.bf16 %v602_v50, %v601_v49 }
 0x238   :  { %957 = vmatmul.mubr.bf16.vlgmr.msra.gmra.mrb[4].mxu1 %v603_v52 }
 0x239   :  { %961 = vmatpush3.bf16.msra.mxu1 %v1072_v51  ;;  %968 = vmatprep.mubr.msk.bf16.mxu1 %vm1132_vm2, %v1131_v4 }
 0x23a   :  { %962 = vmatprep.subr.bf16.mxu1 %v1131_v4 }
 0x23d   :  { %963 = vmatpush3.bf16.msra.mxu1 %v1073_v53 }
 0x23e   :  { %964 = vmatprep.subr.bf16.mxu1 %v1131_v4 }
 0x241   :  { %965 = vmatpush3.bf16.msra.mxu1 %v1074_v54 }
 0x242   :  { %966 = vmatprep.subr.bf16.mxu1 %v1131_v4  ;;  %v889_v4 = vld [vmem:[%s1300_s8] ss:$0 sm:$0xff] }
 0x245   :  { %967 = vmatpush3.bf16.msra.mxu1 %v1075_v55 }
 0x30b   :  { %v709_v57 = vpop.f32.mrb[4].mxu1 }
 0x30c   :  { %v710_v58 = vadd.f32 %v880_v56, %v709_v57  ;;  %v958_v59 = vpop.f32.mrb[5].mxu1 }
 0x30d   :  { %v712_v60 = vpop.f32.mrb[6].mxu1 }
 0x30e   :  { %v716_v61 = vmul.f32 0.01, %v710_v58  ;;  %v713_v62 = vadd.f32 %v880_v56, %v712_v60  ;;  %v959_v63 = vpop.f32.mrb[7].mxu1 }
 0x310   :  { %v717_v0 = vmul.f32 0.01, %v713_v62  ;;  %v718_v1 = vmax.f32 %v710_v58, %v716_v61 }
 0x312   :  { %v719_v2 = vmax.f32 %v713_v62, %v717_v0 }
 0x314   :  { %v720_v3 = vpack.c.bf16 %v719_v2, %v718_v1 }
 0x316   :  { %969 = vmatmul.mubr.msk.bf16.vlgmr.msra.gmra.mrb[8].mxu1 %vm760_vm3, %v720_v3 }
 0x3e9   :  { %v798_v5 = vpop.f32.mrb[8].mxu1 }
 0x3ea   :  { %v970_v6 = vpop.f32.mrb[9].mxu1  ;;  %v799_v8 = vadd.f32 %v889_v4, %v798_v5 }
 0x3eb   :  { %v801_v7 = vpop.f32.mrb[10].mxu1 }
 0x3ec   :  { %v802_v9 = vadd.f32 %v889_v4, %v801_v7  ;;  %v971_v10 = vpop.f32.mrb[11].mxu1 }
 0x3ee   :  { %v902_v11 = vpack.c.bf16 %v802_v9, %v799_v8 }
 0x3f0   :  { %903 = vst [vmem:[%s1301_s9] sm:$0xff] %v902_v11  }
 0x3f1   :  { %819 = vsyncpa [#allocation3], 1 }
 0x3f2   :  { %820 = vsyncpa [#allocation5], 1 }

</bundles_post_ra>
